<compile_context>
chip_gen: v7x
topology: tpu7x:2x2x1
jax: 0.10.0
libtpu: 0.0.40
codegen_flags: <defaults>
</compile_context>

<pallas_src>
import functools

import jax
import jax.numpy as jnp
from jax.experimental import pallas as pl


# --------------------------------------------------------------------------- #
# Pallas kernel: fused conv (single GEMM) + MaxPool + bias + LeakyReLU
# --------------------------------------------------------------------------- #
def conv_block_kernel(p_ref, w_ref, b_ref, o_ref, *, pool_positions, neg_slope):
    """p_ref: (PP*M, K) pool-offset-major im2col patches (M = N*Hp*Wp)
    w_ref: (K, OC)   conv weight, HWIO-flattened (matches patch column order)
    b_ref: (1, OC)   conv bias
    o_ref: (M, OC)   pooled block output, rows ordered (n, hp, wp) == NHWC-flat
    """
    m = o_ref.shape[0]
    # Single MXU push: pool offsets and batch are both folded into the GEMM M dim.
    y = jnp.dot(p_ref[...], w_ref[...], preferred_element_type=jnp.float32)
    # MaxPool = running max over the PP aligned row-slabs (slab stride m is a
    # multiple of 8, so these are plain aligned sublane slices, no relayout).
    pooled = y[0:m]
    for j in range(1, pool_positions):
        pooled = jnp.maximum(pooled, y[j * m:(j + 1) * m])
    # Bias + LeakyReLU hoisted after the max (bias is constant over the pooling
    # window and LeakyReLU is monotone), applied once instead of PP times.
    pooled = pooled + b_ref[...]
    o_ref[...] = jnp.maximum(pooled, neg_slope * pooled).astype(o_ref.dtype)


# --------------------------------------------------------------------------- #
# XLA-side glue: fused im2col + pooling-window patch layout (NHWC input)
# --------------------------------------------------------------------------- #
def _pool_major_patches_nhwc(x_nhwc, kh, kw, pad, ph, pw):
    """Patches for conv(kh,kw,pad,stride=1) fused with a (ph,pw) max-pool.

    Returns (ph*pw * N*Hp*Wp, kh*kw*C): rows grouped pool-offset-major; slab
    j = a*pw + b holds (in (n, hp, wp) order) the conv patch at spatial position
    (hp*ph + a, wp*pw + b).  Column order is (dh, dw, c) == HWIO flattening.
    """
    N, H, W, C = x_nhwc.shape
    xp = jnp.pad(x_nhwc, ((0, 0), (pad, pad), (pad, pad), (0, 0)))
    Ho = H + 2 * pad - kh + 1
    Wo = W + 2 * pad - kw + 1
    taps = [xp[:, dh:dh + Ho, dw:dw + Wo, :]
            for dh in range(kh) for dw in range(kw)]          # each (N, Ho, Wo, C)
    p = jnp.stack(taps, axis=3)                               # (N, Ho, Wo, kh*kw, C)
    K = kh * kw * C
    p = p.reshape(N, Ho, Wo, K)                               # cols = (dh, dw, c)
    Hp, Wp = Ho // ph, Wo // pw                               # MaxPool2d floor mode
    p = p[:, :Hp * ph, :Wp * pw, :]
    p = p.reshape(N, Hp, ph, Wp, pw, K)
    p = p.transpose(2, 4, 0, 1, 3, 5)                         # (ph, pw, N, Hp, Wp, K)
    return p.reshape(ph * pw * N * Hp * Wp, K), Hp, Wp


def conv_lrelu_pool_block(x_nhwc, weight_oihw, bias, pool_hw, *, pad=1,
                          neg_slope=0.01):
    """One conv block on an NHWC activation; returns the pooled NHWC activation."""
    OC, IC, kh, kw = weight_oihw.shape
    ph, pw = pool_hw
    N = x_nhwc.shape[0]
    patches, Hp, Wp = _pool_major_patches_nhwc(x_nhwc, kh, kw, pad, ph, pw)
    K = IC * kh * kw
    M = N * Hp * Wp
    PP = ph * pw
    # OIHW -> HWIO flattening so weight rows match the patch (dh, dw, c) columns.
    w2d = weight_oihw.transpose(2, 3, 1, 0).reshape(K, OC).astype(jnp.float32)
    b2d = bias.reshape(1, OC).astype(jnp.float32)

    kernel = functools.partial(conv_block_kernel, pool_positions=PP,
                               neg_slope=neg_slope)
    out = pl.pallas_call(           # no grid: single invocation, all in VMEM
        kernel,
        out_shape=jax.ShapeDtypeStruct((M, OC), jnp.float32),
    )(patches, w2d, b2d)
    return out.reshape(N, Hp, Wp, OC)          # stays NHWC for the next block


def cnn_forward(params, x_nchw, pool_w, pool_h):
    # PyTorch kernel_size tuples are (kH, kW); the module's (pool_w, pool_h)
    # names therefore apply their FIRST entry to H.  That is preserved here.
    pool_hw = (pool_w, pool_h)
    h = x_nchw.transpose(0, 2, 3, 1)                          # NCHW -> NHWC once
    h = conv_lrelu_pool_block(h, params["w1"], params["b1"], pool_hw)
    h = conv_lrelu_pool_block(h, params["w2"], params["b2"], pool_hw)
    # torch flattens the NCHW activation: (N, C, Hp, Wp) -> (N, C*Hp*Wp)
    return h.transpose(0, 3, 1, 2).reshape(h.shape[0], -1)


# ---------------- pure-JAX reference (for correctness check) ---------------- #
def _ref_layer(x, w, b, ph, pw, neg_slope=0.01):
    y = jax.lax.conv_general_dilated(
        x, w, window_strides=(1, 1), padding=((1, 1), (1, 1)),
        dimension_numbers=("NCHW", "OIHW", "NCHW"),
        precision=jax.lax.Precision.HIGHEST)
    y = y + b.reshape(1, -1, 1, 1)
    y = jnp.where(y > 0, y, neg_slope * y)
    y = jax.lax.reduce_window(y, -jnp.inf, jax.lax.max,
                              (1, 1, ph, pw), (1, 1, ph, pw), "VALID")
    return y


def cnn_reference(params, x, pool_w, pool_h):
    h = _ref_layer(x, params["w1"], params["b1"], pool_w, pool_h)
    h = _ref_layer(h, params["w2"], params["b2"], pool_w, pool_h)
    return h.reshape(h.shape[0], -1)


if __name__ == "__main__":
    conv_w, conv_h = 3, 3          # conv kernel (kH, kW)
    pool_w, pool_h = 2, 2          # pool kernel (kH, kW)

    key = jax.random.PRNGKey(0)
    k1, k2, k3, k4, kx = jax.random.split(key, 5)

    # Deterministic init mimicking PyTorch Conv2d default (uniform +-1/sqrt(fan_in)).
    fan1 = 1 * conv_w * conv_h
    fan2 = 16 * conv_w * conv_h
    b1lim = 1.0 / jnp.sqrt(fan1)
    b2lim = 1.0 / jnp.sqrt(fan2)
    params = {
        "w1": jax.random.uniform(k1, (16, 1, conv_w, conv_h), jnp.float32,
                                 -b1lim, b1lim),
        "b1": jax.random.uniform(k2, (16,), jnp.float32, -b1lim, b1lim),
        "w2": jax.random.uniform(k3, (32, 16, conv_w, conv_h), jnp.float32,
                                 -b2lim, b2lim),
        "b2": jax.random.uniform(k4, (32,), jnp.float32, -b2lim, b2lim),
    }

    x = jax.random.normal(kx, (2, 1, 16, 16), jnp.float32)    # NCHW, like PyTorch

    fwd = jax.jit(cnn_forward, static_argnums=(2, 3))
    out = jax.block_until_ready(fwd(params, x, pool_w, pool_h))
    assert out.shape == (2, 32 * 4 * 4), out.shape

    ref = jax.block_until_ready(cnn_reference(params, x, pool_w, pool_h))
    if not jnp.allclose(out, ref, rtol=5e-3, atol=5e-3):
        raise AssertionError("Pallas CNN output does not match JAX reference")

    print("KERNEL_OK")
</pallas_src>

<mosaic_0001>
module attributes {stable_mosaic.version = 11 : i64} {
  func.func @conv_block_kernel(%arg0: memref<512x9xf32, #tpu.memory_space<vmem>>, %arg1: memref<9x16xf32, #tpu.memory_space<vmem>>, %arg2: memref<1x16xf32, #tpu.memory_space<vmem>>, %arg3: memref<128x16xf32, #tpu.memory_space<vmem>>) attributes {dimension_semantics = [], scalar_prefetch = 0 : i64, scratch_operands = 0 : i64, tpu.core_type = #tpu.core_type<tc>} {
    %c0 = arith.constant 0 : index
    %c0_0 = arith.constant 0 : index
    %0 = vector.load %arg0[%c0, %c0_0] : memref<512x9xf32, #tpu.memory_space<vmem>>, vector<512x9xf32>
    %c0_1 = arith.constant 0 : index
    %c0_2 = arith.constant 0 : index
    %1 = vector.load %arg1[%c0_1, %c0_2] : memref<9x16xf32, #tpu.memory_space<vmem>>, vector<9x16xf32>
    %cst = arith.constant dense<0.000000e+00> : vector<512x16xf32>
    %2 = tpu.matmul %0, %1, %cst {dimension_numbers = #tpu.dot_dimension_numbers<[1], [0], [0], [1], [0, 0, 1, 1], [], []>} : vector<512x9xf32>, vector<9x16xf32>, vector<512x16xf32> -> vector<512x16xf32>
    %3 = vector.extract_strided_slice %2 {offsets = [0, 0], sizes = [128, 16], strides = [1, 1]} : vector<512x16xf32> to vector<128x16xf32>
    %4 = vector.extract_strided_slice %2 {offsets = [128, 0], sizes = [128, 16], strides = [1, 1]} : vector<512x16xf32> to vector<128x16xf32>
    %5 = arith.maximumf %3, %4 : vector<128x16xf32>
    %6 = vector.extract_strided_slice %2 {offsets = [256, 0], sizes = [128, 16], strides = [1, 1]} : vector<512x16xf32> to vector<128x16xf32>
    %7 = arith.maximumf %5, %6 : vector<128x16xf32>
    %8 = vector.extract_strided_slice %2 {offsets = [384, 0], sizes = [128, 16], strides = [1, 1]} : vector<512x16xf32> to vector<128x16xf32>
    %9 = arith.maximumf %7, %8 : vector<128x16xf32>
    %c0_3 = arith.constant 0 : index
    %c0_4 = arith.constant 0 : index
    %10 = vector.load %arg2[%c0_3, %c0_4] : memref<1x16xf32, #tpu.memory_space<vmem>>, vector<1x16xf32>
    %11 = vector.broadcast %10 : vector<1x16xf32> to vector<128x16xf32>
    %12 = arith.addf %9, %11 : vector<128x16xf32>
    %cst_5 = arith.constant 0.00999999977 : f32
    %13 = vector.broadcast %cst_5 : f32 to vector<128x16xf32>
    %14 = arith.mulf %13, %12 : vector<128x16xf32>
    %15 = arith.maximumf %12, %14 : vector<128x16xf32>
    %c0_6 = arith.constant 0 : index
    %c0_7 = arith.constant 0 : index
    %16 = vector.load %arg3[%c0_6, %c0_7] : memref<128x16xf32, #tpu.memory_space<vmem>>, vector<128x16xf32>
    tpu.vector_store %arg3[%c0_6, %c0_7], %15 {strides = array<i32>} : memref<128x16xf32, #tpu.memory_space<vmem>>, vector<128x16xf32>,
    return
  }
}

module attributes {stable_mosaic.version = 11 : i64} {
  func.func @conv_block_kernel(%arg0: memref<128x144xf32, #tpu.memory_space<vmem>>, %arg1: memref<144x32xf32, #tpu.memory_space<vmem>>, %arg2: memref<1x32xf32, #tpu.memory_space<vmem>>, %arg3: memref<32x32xf32, #tpu.memory_space<vmem>>) attributes {dimension_semantics = [], scalar_prefetch = 0 : i64, scratch_operands = 0 : i64, tpu.core_type = #tpu.core_type<tc>} {
    %c0 = arith.constant 0 : index
    %c0_0 = arith.constant 0 : index
    %0 = vector.load %arg0[%c0, %c0_0] : memref<128x144xf32, #tpu.memory_space<vmem>>, vector<128x144xf32>
    %c0_1 = arith.constant 0 : index
    %c0_2 = arith.constant 0 : index
    %1 = vector.load %arg1[%c0_1, %c0_2] : memref<144x32xf32, #tpu.memory_space<vmem>>, vector<144x32xf32>
    %cst = arith.constant dense<0.000000e+00> : vector<128x32xf32>
    %2 = tpu.matmul %0, %1, %cst {dimension_numbers = #tpu.dot_dimension_numbers<[1], [0], [0], [1], [0, 0, 1, 1], [], []>} : vector<128x144xf32>, vector<144x32xf32>, vector<128x32xf32> -> vector<128x32xf32>
    %3 = vector.extract_strided_slice %2 {offsets = [0, 0], sizes = [32, 32], strides = [1, 1]} : vector<128x32xf32> to vector<32x32xf32>
    %4 = vector.extract_strided_slice %2 {offsets = [32, 0], sizes = [32, 32], strides = [1, 1]} : vector<128x32xf32> to vector<32x32xf32>
    %5 = arith.maximumf %3, %4 : vector<32x32xf32>
    %6 = vector.extract_strided_slice %2 {offsets = [64, 0], sizes = [32, 32], strides = [1, 1]} : vector<128x32xf32> to vector<32x32xf32>
    %7 = arith.maximumf %5, %6 : vector<32x32xf32>
    %8 = vector.extract_strided_slice %2 {offsets = [96, 0], sizes = [32, 32], strides = [1, 1]} : vector<128x32xf32> to vector<32x32xf32>
    %9 = arith.maximumf %7, %8 : vector<32x32xf32>
    %c0_3 = arith.constant 0 : index
    %c0_4 = arith.constant 0 : index
    %10 = vector.load %arg2[%c0_3, %c0_4] : memref<1x32xf32, #tpu.memory_space<vmem>>, vector<1x32xf32>
    %11 = vector.broadcast %10 : vector<1x32xf32> to vector<32x32xf32>
    %12 = arith.addf %9, %11 : vector<32x32xf32>
    %cst_5 = arith.constant 0.00999999977 : f32
    %13 = vector.broadcast %cst_5 : f32 to vector<32x32xf32>
    %14 = arith.mulf %13, %12 : vector<32x32xf32>
    %15 = arith.maximumf %12, %14 : vector<32x32xf32>
    %c0_6 = arith.constant 0 : index
    %c0_7 = arith.constant 0 : index
    %16 = vector.load %arg3[%c0_6, %c0_7] : memref<32x32xf32, #tpu.memory_space<vmem>>, vector<32x32xf32>
    tpu.vector_store %arg3[%c0_6, %c0_7], %15 {strides = array<i32>} : memref<32x32xf32, #tpu.memory_space<vmem>>, vector<32x32xf32>,
    return
  }
}

</mosaic_0001>

<bundles_post_ra>
// kernel: cnn_forward.2
= control target key start
LH: loop header
LB: loop body
LE: loop exit
PB: predicated region body
PF: predicated region fallthrough
CT: control target
= control target key end

     0   :  { %vm273_vm0 = vcmask 1040384   ;;  %vm80_vm1 = vcmask 72704   ;;  %vm1027_vm2 = vmmov 1   ;;  %vm765_vm4 = vcmask 130048   ;;  %s1458_s1 = inlined_call_operand.vmem [shape: f32[9,16], index: 1, kind: input, shape index: {}]   ;;  %s1459_s0 = inlined_call_operand.vmem [shape: f32[512,9], index: 0, kind: input, shape index: {}]   ;;  %s1460_s2 = inlined_call_operand.vmem [shape: f32[1,16], index: 2, kind: input, shape index: {}]   ;;  %s1461_s3 = inlined_call_operand.vmem [shape: f32[128,16], index: 3, kind: output, shape index: {}]  }
   0x1   :  { %v78_v0 = vld [vmem:[%s1458_s1] sm:$0xff]  ;;  %v79_v1 = vld [vmem:[%s1458_s1 + $0x8] sm:$0x1]  ;;  %vm1019_vm3 = vmpackc.low %vm273_vm0, %vm1027_vm2 }
   0x2   :  { %v1018_v2 = vpack.c.bf16 %v79_v1, %v78_v0  ;;  %v14_v3 = vld [vmem:[%s1459_s0] sm:$0xff]  ;;  %v15_v5 = vld [vmem:[%s1459_s0 + $0x8] sm:$0xff]  ;;  %v16_v7 = vld [vmem:[%s1459_s0 + $0x10] sm:$0xff] }
   0x3   :  { %v46_v4 = vld [vmem:[%s1459_s0 + $0x100] sm:$0xff]  ;;  %922 = vmatprep.mubr.msk.f32.mxu0 %vm80_vm1, %v14_v3  ;;  %v47_v6 = vld [vmem:[%s1459_s0 + $0x108] sm:$0xff]  ;;  %v48_v8 = vld [vmem:[%s1459_s0 + $0x110] sm:$0xff] }
   0x4   :  { %970 = vmatprep.mubr.msk.f32.mxu1 %vm80_vm1, %v46_v4  ;;  %1020 = vmatprep.subr.msk.bf16.mxu0 %vm1019_vm3, %v1018_v2  ;;  %v17_v9 = vld [vmem:[%s1459_s0 + $0x18] sm:$0xff]  ;;  %v18_v11 = vld [vmem:[%s1459_s0 + $0x20] sm:$0xff]  ;;  %v19_v13 = vld [vmem:[%s1459_s0 + $0x28] sm:$0xff] }
   0x5   :  { %1024 = vmatprep.subr.msk.bf16.mxu1 %vm1019_vm3, %v1018_v2  ;;  %1023 = vmatpush3.bf16.msk.msra.mxu0 %vm1019_vm3, %v1018_v2  ;;  %v49_v10 = vld [vmem:[%s1459_s0 + $0x118] sm:$0xff]  ;;  %v50_v12 = vld [vmem:[%s1459_s0 + $0x120] sm:$0xff]  ;;  %v51_v14 = vld [vmem:[%s1459_s0 + $0x128] sm:$0xff] }
   0x6   :  { %1025 = vmatpush3.bf16.msk.msra.mxu1 %vm1019_vm3, %v1018_v2  ;;  %v20_v15 = vld [vmem:[%s1459_s0 + $0x30] sm:$0xff]  ;;  %v21_v17 = vld [vmem:[%s1459_s0 + $0x38] sm:$0xff]  ;;  %v22_v19 = vld [vmem:[%s1459_s0 + $0x40] sm:$0xff] }
   0x7   :  { %v52_v16 = vld [vmem:[%s1459_s0 + $0x130] sm:$0xff]  ;;  %v53_v18 = vld [vmem:[%s1459_s0 + $0x138] sm:$0xff]  ;;  %v54_v20 = vld [vmem:[%s1459_s0 + $0x140] sm:$0xff] }
   0x8   :  { %923 = vmatmul.mubr.msk.f32.vlgmr.msra.gmra.mrb[0].mxu0 %vm80_vm1, %v15_v5  ;;  %v23_v21 = vld [vmem:[%s1459_s0 + $0x48] sm:$0xff]  ;;  %v24_v23 = vld [vmem:[%s1459_s0 + $0x50] sm:$0xff]  ;;  %v25_v25 = vld [vmem:[%s1459_s0 + $0x58] sm:$0xff] }
   0x9   :  { %971 = vmatmul.mubr.msk.f32.vlgmr.msra.gmra.mrb[0].mxu1 %vm80_vm1, %v47_v6  ;;  %925 = vmatprep.mubr.msk.f32.mxu0 %vm80_vm1, %v16_v7  ;;  %v55_v22 = vld [vmem:[%s1459_s0 + $0x148] sm:$0xff]  ;;  %v56_v24 = vld [vmem:[%s1459_s0 + $0x150] sm:$0xff]  ;;  %v57_v26 = vld [vmem:[%s1459_s0 + $0x158] sm:$0xff] }
   0xa   :  { %973 = vmatprep.mubr.msk.f32.mxu1 %vm80_vm1, %v48_v8  ;;  %v26_v27 = vld [vmem:[%s1459_s0 + $0x60] sm:$0xff]  ;;  %v27_v29 = vld [vmem:[%s1459_s0 + $0x68] sm:$0xff]  ;;  %v28_v31 = vld [vmem:[%s1459_s0 + $0x70] sm:$0xff] }
   0xb   :  { %v58_v28 = vld [vmem:[%s1459_s0 + $0x160] sm:$0xff]  ;;  %v59_v30 = vld [vmem:[%s1459_s0 + $0x168] sm:$0xff]  ;;  %v60_v32 = vld [vmem:[%s1459_s0 + $0x170] sm:$0xff] }
   0xc   :  { %926 = vmatmul.mubr.msk.f32.gmra.mrb[2].mxu0 %vm80_vm1, %v17_v9  ;;  %v29_v33 = vld [vmem:[%s1459_s0 + $0x78] sm:$0xff]  ;;  %v30_v35 = vld [vmem:[%s1459_s0 + $0x80] sm:$0xff]  ;;  %v31_v37 = vld [vmem:[%s1459_s0 + $0x88] sm:$0xff] }
   0xd   :  { %974 = vmatmul.mubr.msk.f32.gmra.mrb[2].mxu1 %vm80_vm1, %v49_v10  ;;  %928 = vmatprep.mubr.msk.f32.mxu0 %vm80_vm1, %v18_v11  ;;  %v61_v34 = vld [vmem:[%s1459_s0 + $0x178] sm:$0xff]  ;;  %v62_v36 = vld [vmem:[%s1459_s0 + $0x180] sm:$0xff]  ;;  %v63_v38 = vld [vmem:[%s1459_s0 + $0x188] sm:$0xff] }
   0xe   :  { %976 = vmatprep.mubr.msk.f32.mxu1 %vm80_vm1, %v50_v12  ;;  %v32_v39 = vld [vmem:[%s1459_s0 + $0x90] sm:$0xff]  ;;  %v33_v41 = vld [vmem:[%s1459_s0 + $0x98] sm:$0xff]  ;;  %v34_v43 = vld [vmem:[%s1459_s0 + $0xa0] sm:$0xff] }
   0xf   :  { %v64_v40 = vld [vmem:[%s1459_s0 + $0x190] sm:$0xff]  ;;  %v65_v42 = vld [vmem:[%s1459_s0 + $0x198] sm:$0xff]  ;;  %v66_v44 = vld [vmem:[%s1459_s0 + $0x1a0] sm:$0xff] }
  0x10   :  { %929 = vmatmul.mubr.msk.f32.gmra.mrb[4].mxu0 %vm80_vm1, %v19_v13  ;;  %v35_v45 = vld [vmem:[%s1459_s0 + $0xa8] sm:$0xff]  ;;  %v36_v47 = vld [vmem:[%s1459_s0 + $0xb0] sm:$0xff]  ;;  %v37_v49 = vld [vmem:[%s1459_s0 + $0xb8] sm:$0xff] }
  0x11   :  { %977 = vmatmul.mubr.msk.f32.gmra.mrb[4].mxu1 %vm80_vm1, %v51_v14  ;;  %931 = vmatprep.mubr.msk.f32.mxu0 %vm80_vm1, %v20_v15  ;;  %v67_v46 = vld [vmem:[%s1459_s0 + $0x1a8] sm:$0xff]  ;;  %v68_v48 = vld [vmem:[%s1459_s0 + $0x1b0] sm:$0xff]  ;;  %v69_v50 = vld [vmem:[%s1459_s0 + $0x1b8] sm:$0xff] }
  0x12   :  { %979 = vmatprep.mubr.msk.f32.mxu1 %vm80_vm1, %v52_v16  ;;  %v38_v51 = vld [vmem:[%s1459_s0 + $0xc0] sm:$0xff]  ;;  %v39_v53 = vld [vmem:[%s1459_s0 + $0xc8] sm:$0xff]  ;;  %v40_v55 = vld [vmem:[%s1459_s0 + $0xd0] sm:$0xff] }
  0x13   :  { %v70_v52 = vld [vmem:[%s1459_s0 + $0x1c0] sm:$0xff]  ;;  %v71_v54 = vld [vmem:[%s1459_s0 + $0x1c8] sm:$0xff]  ;;  %v72_v56 = vld [vmem:[%s1459_s0 + $0x1d0] sm:$0xff] }
  0x14   :  { %932 = vmatmul.mubr.msk.f32.gmra.mrb[6].mxu0 %vm80_vm1, %v21_v17  ;;  %v41_v57 = vld [vmem:[%s1459_s0 + $0xd8] sm:$0xff]  ;;  %v42_v59 = vld [vmem:[%s1459_s0 + $0xe0] sm:$0xff]  ;;  %v43_v61 = vld [vmem:[%s1459_s0 + $0xe8] sm:$0xff] }
  0x15   :  { %980 = vmatmul.mubr.msk.f32.gmra.mrb[6].mxu1 %vm80_vm1, %v53_v18  ;;  %934 = vmatprep.mubr.msk.f32.mxu0 %vm80_vm1, %v22_v19  ;;  %v73_v58 = vld [vmem:[%s1459_s0 + $0x1d8] sm:$0xff]  ;;  %v74_v60 = vld [vmem:[%s1459_s0 + $0x1e0] sm:$0xff]  ;;  %v75_v62 = vld [vmem:[%s1459_s0 + $0x1e8] sm:$0xff] }
  0x16   :  { %982 = vmatprep.mubr.msk.f32.mxu1 %vm80_vm1, %v54_v20  ;;  %v44_v63 = vld [vmem:[%s1459_s0 + $0xf0] sm:$0xff]  ;;  %v45_v1 = vld [vmem:[%s1459_s0 + $0xf8] sm:$0xff] }
  0x17   :  { %v76_v0 = vld [vmem:[%s1459_s0 + $0x1f0] sm:$0xff]  ;;  %v77_v2 = vld [vmem:[%s1459_s0 + $0x1f8] sm:$0xff] }
  0x18   :  { %935 = vmatmul.mubr.msk.f32.gmra.mrb[8].mxu0 %vm80_vm1, %v23_v21 }
  0x19   :  { %983 = vmatmul.mubr.msk.f32.gmra.mrb[8].mxu1 %vm80_vm1, %v55_v22  ;;  %937 = vmatprep.mubr.msk.f32.mxu0 %vm80_vm1, %v24_v23 }
  0x1a   :  { %985 = vmatprep.mubr.msk.f32.mxu1 %vm80_vm1, %v56_v24 }
  0x1c   :  { %938 = vmatmul.mubr.msk.f32.gmra.mrb[10].mxu0 %vm80_vm1, %v25_v25 }
  0x1d   :  { %986 = vmatmul.mubr.msk.f32.gmra.mrb[10].mxu1 %vm80_vm1, %v57_v26  ;;  %940 = vmatprep.mubr.msk.f32.mxu0 %vm80_vm1, %v26_v27 }
  0x1e   :  { %988 = vmatprep.mubr.msk.f32.mxu1 %vm80_vm1, %v58_v28 }
  0x20   :  { %941 = vmatmul.mubr.msk.f32.gmra.mrb[12].mxu0 %vm80_vm1, %v27_v29 }
  0x21   :  { %989 = vmatmul.mubr.msk.f32.gmra.mrb[12].mxu1 %vm80_vm1, %v59_v30  ;;  %943 = vmatprep.mubr.msk.f32.mxu0 %vm80_vm1, %v28_v31 }
  0x22   :  { %991 = vmatprep.mubr.msk.f32.mxu1 %vm80_vm1, %v60_v32 }
  0x24   :  { %944 = vmatmul.mubr.msk.f32.gmra.mrb[14].mxu0 %vm80_vm1, %v29_v33 }
  0x25   :  { %992 = vmatmul.mubr.msk.f32.gmra.mrb[14].mxu1 %vm80_vm1, %v61_v34  ;;  %946 = vmatprep.mubr.msk.f32.mxu0 %vm80_vm1, %v30_v35 }
  0x26   :  { %994 = vmatprep.mubr.msk.f32.mxu1 %vm80_vm1, %v62_v36 }
  0x28   :  { %947 = vmatmul.mubr.msk.f32.gmra.mrb[16].mxu0 %vm80_vm1, %v31_v37 }
  0x29   :  { %995 = vmatmul.mubr.msk.f32.gmra.mrb[16].mxu1 %vm80_vm1, %v63_v38  ;;  %949 = vmatprep.mubr.msk.f32.mxu0 %vm80_vm1, %v32_v39 }
  0x2a   :  { %997 = vmatprep.mubr.msk.f32.mxu1 %vm80_vm1, %v64_v40 }
  0x2c   :  { %950 = vmatmul.mubr.msk.f32.gmra.mrb[18].mxu0 %vm80_vm1, %v33_v41 }
  0x2d   :  { %998 = vmatmul.mubr.msk.f32.gmra.mrb[18].mxu1 %vm80_vm1, %v65_v42  ;;  %952 = vmatprep.mubr.msk.f32.mxu0 %vm80_vm1, %v34_v43  ;;  %v1355_v42 = vld [vmem:[%s1460_s2] ss:$0 sm:$0xff] }
  0x2e   :  { %1000 = vmatprep.mubr.msk.f32.mxu1 %vm80_vm1, %v66_v44 }
  0x30   :  { %953 = vmatmul.mubr.msk.f32.gmra.mrb[20].mxu0 %vm80_vm1, %v35_v45 }
  0x31   :  { %1001 = vmatmul.mubr.msk.f32.gmra.mrb[20].mxu1 %vm80_vm1, %v67_v46  ;;  %955 = vmatprep.mubr.msk.f32.mxu0 %vm80_vm1, %v36_v47 }
  0x32   :  { %1003 = vmatprep.mubr.msk.f32.mxu1 %vm80_vm1, %v68_v48 }
  0x34   :  { %956 = vmatmul.mubr.msk.f32.gmra.mrb[22].mxu0 %vm80_vm1, %v37_v49 }
  0x35   :  { %1004 = vmatmul.mubr.msk.f32.gmra.mrb[22].mxu1 %vm80_vm1, %v69_v50  ;;  %958 = vmatprep.mubr.msk.f32.mxu0 %vm80_vm1, %v38_v51 }
  0x36   :  { %1006 = vmatprep.mubr.msk.f32.mxu1 %vm80_vm1, %v70_v52 }
  0x38   :  { %959 = vmatmul.mubr.msk.f32.gmra.mrb[24].mxu0 %vm80_vm1, %v39_v53 }
  0x39   :  { %1007 = vmatmul.mubr.msk.f32.gmra.mrb[24].mxu1 %vm80_vm1, %v71_v54  ;;  %961 = vmatprep.mubr.msk.f32.mxu0 %vm80_vm1, %v40_v55 }
  0x3a   :  { %1009 = vmatprep.mubr.msk.f32.mxu1 %vm80_vm1, %v72_v56 }
  0x3c   :  { %962 = vmatmul.mubr.msk.f32.gmra.mrb[26].mxu0 %vm80_vm1, %v41_v57 }
  0x3d   :  { %1010 = vmatmul.mubr.msk.f32.gmra.mrb[26].mxu1 %vm80_vm1, %v73_v58  ;;  %964 = vmatprep.mubr.msk.f32.mxu0 %vm80_vm1, %v42_v59 }
  0x3e   :  { %1012 = vmatprep.mubr.msk.f32.mxu1 %vm80_vm1, %v74_v60 }
  0x40   :  { %965 = vmatmul.mubr.msk.f32.gmra.mrb[28].mxu0 %vm80_vm1, %v43_v61 }
  0x41   :  { %1013 = vmatmul.mubr.msk.f32.gmra.mrb[28].mxu1 %vm80_vm1, %v75_v62  ;;  %967 = vmatprep.mubr.msk.f32.mxu0 %vm80_vm1, %v44_v63 }
  0x42   :  { %1015 = vmatprep.mubr.msk.f32.mxu1 %vm80_vm1, %v76_v0 }
  0x44   :  { %968 = vmatmul.mubr.msk.f32.gmra.mrb[30].mxu0 %vm80_vm1, %v45_v1 }
  0x45   :  { %1016 = vmatmul.mubr.msk.f32.gmra.mrb[30].mxu1 %vm80_vm1, %v77_v2 }
  0xdb   :  { %v924_v3 = vpop.f32.mrb[0].mxu0 }
  0xdc   :  { %v972_v4 = vpop.f32.mrb[0].mxu1  ;;  %v343_v5 = vpop.f32.mrb[1].mxu0 }
  0xdd   :  { %v503_v6 = vpop.f32.mrb[1].mxu1 }
  0xdf   :  { %v927_v7 = vpop.f32.mrb[2].mxu0 }
  0xe0   :  { %v975_v8 = vpop.f32.mrb[2].mxu1  ;;  %v353_v9 = vpop.f32.mrb[3].mxu0 }
  0xe1   :  { %v513_v10 = vpop.f32.mrb[3].mxu1 }
  0xe3   :  { %v930_v11 = vpop.f32.mrb[4].mxu0 }
  0xe4   :  { %v978_v12 = vpop.f32.mrb[4].mxu1  ;;  %v1310_v13 = vpop.f32.mrb[5].mxu0 }
  0xe5   :  { %v523_v14 = vpop.f32.mrb[5].mxu1 }
  0xe7   :  { %v1312_v15 = vpop.f32.mrb[6].mxu0 }
  0xe8   :  { %v1314_v16 = vpop.f32.mrb[6].mxu1  ;;  %v1316_v17 = vpop.f32.mrb[7].mxu0 }
  0xe9   :  { %v1318_v18 = vpop.f32.mrb[7].mxu1 }
  0xeb   :  { %v1320_v19 = vpop.f32.mrb[8].mxu0 }
  0xec   :  { %v1322_v20 = vpop.f32.mrb[8].mxu1  ;;  %v1324_v21 = vpop.f32.mrb[9].mxu0 }
  0xed   :  { %v1326_v22 = vpop.f32.mrb[9].mxu1 }
  0xef   :  { %v1328_v23 = vpop.f32.mrb[10].mxu0 }
  0xf0   :  { %v1330_v24 = vpop.f32.mrb[10].mxu1  ;;  %v1332_v25 = vpop.f32.mrb[11].mxu0 }
  0xf1   :  { %v1334_v26 = vpop.f32.mrb[11].mxu1 }
  0xf3   :  { %v1336_v27 = vpop.f32.mrb[12].mxu0 }
  0xf4   :  { %v1338_v28 = vpop.f32.mrb[12].mxu1  ;;  %v1340_v29 = vpop.f32.mrb[13].mxu0 }
  0xf5   :  { %v1342_v30 = vpop.f32.mrb[13].mxu1 }
  0xf7   :  { %v1344_v31 = vpop.f32.mrb[14].mxu0 }
  0xf8   :  { %v1346_v32 = vpop.f32.mrb[14].mxu1  ;;  %v1348_v33 = vpop.f32.mrb[15].mxu0 }
  0xf9   :  { %v1350_v34 = vpop.f32.mrb[15].mxu1 }
  0xfb   :  { %v948_v35 = vpop.f32.mrb[16].mxu0 }
  0xfc   :  { %v996_v36 = vpop.f32.mrb[16].mxu1  ;;  %v663_v37 = vmax.f32 %v924_v3, %v948_v35  ;;  %v423_v38 = vpop.f32.mrb[17].mxu0 }
  0xfd   :  { %v583_v39 = vpop.f32.mrb[17].mxu1  ;;  %v662_v40 = vmax.f32 %v343_v5, %v423_v38 }
  0xfe   :  { %v679_v41 = vmax.f32 %v663_v37, %v972_v4 }
  0xff   :  { %v951_v43 = vpop.f32.mrb[18].mxu0  ;;  %v678_v44 = vmax.f32 %v662_v40, %v503_v6 }
 0x100   :  { %v999_v45 = vpop.f32.mrb[18].mxu1  ;;  %v695_v46 = vmax.f32 %v679_v41, %v996_v36  ;;  %v665_v47 = vmax.f32 %v927_v7, %v951_v43  ;;  %v433_v48 = vpop.f32.mrb[19].mxu0 }
 0x101   :  { %v593_v49 = vpop.f32.mrb[19].mxu1  ;;  %v694_v50 = vmax.f32 %v678_v44, %v583_v39  ;;  %v664_v51 = vmax.f32 %v353_v9, %v433_v48 }
 0x102   :  { %v718_v52 = vadd.f32 %v1355_v42, %v695_v46  ;;  %v681_v53 = vmax.f32 %v665_v47, %v975_v8 }
 0x103   :  { %v717_v54 = vadd.f32 %v1355_v42, %v694_v50  ;;  %v954_v55 = vpop.f32.mrb[20].mxu0  ;;  %v680_v56 = vmax.f32 %v664_v51, %v513_v10 }
 0x104   :  { %v1002_v57 = vpop.f32.mrb[20].mxu1  ;;  %v734_v58 = vmul.f32 0.01, %v718_v52  ;;  %v697_v59 = vmax.f32 %v681_v53, %v999_v45  ;;  %v667_v60 = vmax.f32 %v930_v11, %v954_v55  ;;  %v443_v61 = vpop.f32.mrb[21].mxu0 }
 0x105   :  { %v603_v62 = vpop.f32.mrb[21].mxu1  ;;  %v733_v63 = vmul.f32 0.01, %v717_v54  ;;  %v696_v0 = vmax.f32 %v680_v56, %v593_v49  ;;  %v666_v1 = vmax.f32 %v1310_v13, %v443_v61 }
 0x106   :  { %v750_v2 = vmax.f32 %v718_v52, %v734_v58  ;;  %v720_v3 = vadd.f32 %v1355_v42, %v697_v59  ;;  %v683_v4 = vmax.f32 %v667_v60, %v978_v12 }
 0x107   :  { %v749_v5 = vmax.f32 %v717_v54, %v733_v63  ;;  %v719_v6 = vadd.f32 %v1355_v42, %v696_v0  ;;  %v957_v7 = vpop.f32.mrb[22].mxu0  ;;  %v682_v8 = vmax.f32 %v666_v1, %v523_v14 }
 0x108   :  { %v1005_v9 = vpop.f32.mrb[22].mxu1  ;;  %767 = vst.msk [vmem:[%s1461_s3 + $0x8] sm:$0xff] %vm765_vm4, %v750_v2  ;;  %v736_v10 = vmul.f32 0.01, %v720_v3  ;;  %v699_v11 = vmax.f32 %v683_v4, %v1002_v57  ;;  %v669_v35 = vmax.f32 %v1312_v15, %v957_v7  ;;  %v453_v13 = vpop.f32.mrb[23].mxu0 }
 0x109   :  { %v613_v36 = vpop.f32.mrb[23].mxu1  ;;  %766 = vst.msk [vmem:[%s1461_s3] sm:$0xff] %vm765_vm4, %v749_v5  ;;  %v735_v12 = vmul.f32 0.01, %v719_v6  ;;  %v698_v37 = vmax.f32 %v682_v8, %v603_v62  ;;  %v668_v14 = vmax.f32 %v1316_v17, %v453_v13 }
 0x10a   :  { %v752_v38 = vmax.f32 %v720_v3, %v736_v10  ;;  %v722_v39 = vadd.f32 %v1355_v42, %v699_v11  ;;  %v685_v40 = vmax.f32 %v669_v35, %v1314_v16 }
 0x10b   :  { %v751_v41 = vmax.f32 %v719_v6, %v735_v12  ;;  %v721_v43 = vadd.f32 %v1355_v42, %v698_v37  ;;  %v960_v15 = vpop.f32.mrb[24].mxu0  ;;  %v684_v44 = vmax.f32 %v668_v14, %v1318_v18 }
 0x10c   :  { %v1008_v45 = vpop.f32.mrb[24].mxu1  ;;  %769 = vst.msk [vmem:[%s1461_s3 + $0x18] sm:$0xff] %vm765_vm4, %v752_v38  ;;  %v738_v46 = vmul.f32 0.01, %v722_v39  ;;  %v701_v47 = vmax.f32 %v685_v40, %v1005_v9  ;;  %v671_v17 = vmax.f32 %v1320_v19, %v960_v15  ;;  %v463_v48 = vpop.f32.mrb[25].mxu0 }
 0x10d   :  { %v623_v49 = vpop.f32.mrb[25].mxu1  ;;  %768 = vst.msk [vmem:[%s1461_s3 + $0x10] sm:$0xff] %vm765_vm4, %v751_v41  ;;  %v737_v16 = vmul.f32 0.01, %v721_v43  ;;  %v700_v50 = vmax.f32 %v684_v44, %v613_v36  ;;  %v670_v18 = vmax.f32 %v1324_v21, %v463_v48 }
 0x10e   :  { %v754_v51 = vmax.f32 %v722_v39, %v738_v46  ;;  %v724_v52 = vadd.f32 %v1355_v42, %v701_v47  ;;  %v687_v53 = vmax.f32 %v671_v17, %v1322_v20 }
 0x10f   :  { %v753_v54 = vmax.f32 %v721_v43, %v737_v16  ;;  %v723_v55 = vadd.f32 %v1355_v42, %v700_v50  ;;  %v963_v19 = vpop.f32.mrb[26].mxu0  ;;  %v686_v56 = vmax.f32 %v670_v18, %v1326_v22 }
 0x110   :  { %v1011_v57 = vpop.f32.mrb[26].mxu1  ;;  %771 = vst.msk [vmem:[%s1461_s3 + $0x28] sm:$0xff] %vm765_vm4, %v754_v51  ;;  %v740_v58 = vmul.f32 0.01, %v724_v52  ;;  %v703_v59 = vmax.f32 %v687_v53, %v1008_v45  ;;  %v673_v21 = vmax.f32 %v1328_v23, %v963_v19  ;;  %v473_v60 = vpop.f32.mrb[27].mxu0 }
 0x111   :  { %v633_v61 = vpop.f32.mrb[27].mxu1  ;;  %770 = vst.msk [vmem:[%s1461_s3 + $0x20] sm:$0xff] %vm765_vm4, %v753_v54  ;;  %v739_v20 = vmul.f32 0.01, %v723_v55  ;;  %v702_v62 = vmax.f32 %v686_v56, %v623_v49  ;;  %v672_v22 = vmax.f32 %v1332_v25, %v473_v60 }
 0x112   :  { %v756_v63 = vmax.f32 %v724_v52, %v740_v58  ;;  %v726_v0 = vadd.f32 %v1355_v42, %v703_v59  ;;  %v689_v1 = vmax.f32 %v673_v21, %v1330_v24 }
 0x113   :  { %v755_v2 = vmax.f32 %v723_v55, %v739_v20  ;;  %v725_v3 = vadd.f32 %v1355_v42, %v702_v62  ;;  %v966_v23 = vpop.f32.mrb[28].mxu0  ;;  %v688_v4 = vmax.f32 %v672_v22, %v1334_v26 }
 0x114   :  { %v1014_v5 = vpop.f32.mrb[28].mxu1  ;;  %773 = vst.msk [vmem:[%s1461_s3 + $0x38] sm:$0xff] %vm765_vm4, %v756_v63  ;;  %v742_v6 = vmul.f32 0.01, %v726_v0  ;;  %v705_v7 = vmax.f32 %v689_v1, %v1011_v57  ;;  %v675_v25 = vmax.f32 %v1336_v27, %v966_v23  ;;  %v483_v8 = vpop.f32.mrb[29].mxu0 }
 0x115   :  { %v643_v9 = vpop.f32.mrb[29].mxu1  ;;  %772 = vst.msk [vmem:[%s1461_s3 + $0x30] sm:$0xff] %vm765_vm4, %v755_v2  ;;  %v741_v24 = vmul.f32 0.01, %v725_v3  ;;  %v704_v10 = vmax.f32 %v688_v4, %v633_v61  ;;  %v674_v26 = vmax.f32 %v1340_v29, %v483_v8 }
 0x116   :  { %v758_v11 = vmax.f32 %v726_v0, %v742_v6  ;;  %v728_v35 = vadd.f32 %v1355_v42, %v705_v7  ;;  %v691_v13 = vmax.f32 %v675_v25, %v1338_v28 }
 0x117   :  { %v757_v36 = vmax.f32 %v725_v3, %v741_v24  ;;  %v727_v12 = vadd.f32 %v1355_v42, %v704_v10  ;;  %v969_v27 = vpop.f32.mrb[30].mxu0  ;;  %v690_v37 = vmax.f32 %v674_v26, %v1342_v30 }
 0x118   :  { %v1017_v14 = vpop.f32.mrb[30].mxu1  ;;  %775 = vst.msk [vmem:[%s1461_s3 + $0x48] sm:$0xff] %vm765_vm4, %v758_v11  ;;  %v744_v38 = vmul.f32 0.01, %v728_v35  ;;  %v707_v39 = vmax.f32 %v691_v13, %v1014_v5  ;;  %v677_v29 = vmax.f32 %v1344_v31, %v969_v27  ;;  %v493_v40 = vpop.f32.mrb[31].mxu0 }
 0x119   :  { %v653_v41 = vpop.f32.mrb[31].mxu1  ;;  %774 = vst.msk [vmem:[%s1461_s3 + $0x40] sm:$0xff] %vm765_vm4, %v757_v36  ;;  %v743_v28 = vmul.f32 0.01, %v727_v12  ;;  %v706_v43 = vmax.f32 %v690_v37, %v643_v9  ;;  %v676_v30 = vmax.f32 %v1348_v33, %v493_v40 }
 0x11a   :  { %v760_v15 = vmax.f32 %v728_v35, %v744_v38  ;;  %v730_v44 = vadd.f32 %v1355_v42, %v707_v39  ;;  %v693_v45 = vmax.f32 %v677_v29, %v1346_v32 }
 0x11b   :  { %v759_v46 = vmax.f32 %v727_v12, %v743_v28  ;;  %v729_v47 = vadd.f32 %v1355_v42, %v706_v43  ;;  %v692_v31 = vmax.f32 %v676_v30, %v1350_v34 }
 0x11c   :  { %777 = vst.msk [vmem:[%s1461_s3 + $0x58] sm:$0xff] %vm765_vm4, %v760_v15  ;;  %v746_v17 = vmul.f32 0.01, %v730_v44  ;;  %v709_v48 = vmax.f32 %v693_v45, %v1017_v14 }
 0x11d   :  { %776 = vst.msk [vmem:[%s1461_s3 + $0x50] sm:$0xff] %vm765_vm4, %v759_v46  ;;  %v745_v33 = vmul.f32 0.01, %v729_v47  ;;  %v708_v49 = vmax.f32 %v692_v31, %v653_v41 }
 0x11e   :  { %v762_v32 = vmax.f32 %v730_v44, %v746_v17  ;;  %v732_v16 = vadd.f32 %v1355_v42, %v709_v48 }
 0x11f   :  { %v761_v50 = vmax.f32 %v729_v47, %v745_v33  ;;  %v731_v34 = vadd.f32 %v1355_v42, %v708_v49 }
 0x120   :  { %779 = vst.msk [vmem:[%s1461_s3 + $0x68] sm:$0xff] %vm765_vm4, %v762_v32  ;;  %v748_v18 = vmul.f32 0.01, %v732_v16 }
 0x121   :  { %778 = vst.msk [vmem:[%s1461_s3 + $0x60] sm:$0xff] %vm765_vm4, %v761_v50  ;;  %v747_v51 = vmul.f32 0.01, %v731_v34 }
 0x122   :  { %v764_v52 = vmax.f32 %v732_v16, %v748_v18 }
 0x123   :  { %v763_v53 = vmax.f32 %v731_v34, %v747_v51 }
 0x124   :  { %781 = vst.msk [vmem:[%s1461_s3 + $0x78] sm:$0xff] %vm765_vm4, %v764_v52 }
 0x125   :  { %780 = vst.msk [vmem:[%s1461_s3 + $0x70] sm:$0xff] %vm765_vm4, %v763_v53 }

// kernel: cnn_forward.3
= control target key start
LH: loop header
LB: loop body
LE: loop exit
PB: predicated region body
PF: predicated region fallthrough
CT: control target
= control target key end

     0   :  { %v361_v0 = vmov 0.0|0.0   ;;  %vm64_vm0 = vcmask 130048   ;;  %vm289_vm1 = vcmask 261120   ;;  %s585_s1 = inlined_call_operand.vmem [shape: f32[144,32], index: 1, kind: input, shape index: {}]   ;;  %s586_s0 = inlined_call_operand.vmem [shape: f32[128,144], index: 0, kind: input, shape index: {}]   ;;  %s587_s2 = inlined_call_operand.vmem [shape: f32[1,32], index: 2, kind: input, shape index: {}]   ;;  %s588_s3 = inlined_call_operand.vmem [shape: f32[32,32], index: 3, kind: output, shape index: {}]  }
   0x1   :  { %315 = vmatprep.subr.bf16.mxu0 %v361_v0  ;;  %v46_v1 = vld [vmem:[%s585_s1] sm:$0xff]  ;;  %v47_v2 = vld [vmem:[%s585_s1 + $0x8] sm:$0xff]  ;;  %342 = vmatprep.subr.bf16.mxu1 %v361_v0  ;;  %v48_v3 = vld [vmem:[%s585_s1 + $0x10] sm:$0xff] }
   0x2   :  { %v316_v4 = vpack.c.bf16 %v47_v2, %v46_v1  ;;  %v49_v5 = vld [vmem:[%s585_s1 + $0x18] sm:$0xff]  ;;  %v50_v7 = vld [vmem:[%s585_s1 + $0x20] sm:$0xff]  ;;  %v51_v8 = vld [vmem:[%s585_s1 + $0x28] sm:$0xff] }
   0x3   :  { %v319_v6 = vpack.c.bf16 %v49_v5, %v48_v3  ;;  %v15_v9 = vld [vmem:[%s586_s0 + $0x8] sm:$0xff]  ;;  %v322_v11 = vpack.c.bf16 %v51_v8, %v50_v7  ;;  %v52_v12 = vld [vmem:[%s585_s1 + $0x30] sm:$0xff]  ;;  %v53_v13 = vld [vmem:[%s585_s1 + $0x38] sm:$0xff] }
   0x4   :  { %317 = vmatpush1.bf16.msra.mxu0 %v316_v4  ;;  %351 = vmatpush1.bf16.msra.mxu1 %v316_v4  ;;  %v31_v10 = vld [vmem:[%s586_s0 + $0x88] sm:$0xff]  ;;  %v325_v14 = vpack.c.bf16 %v53_v13, %v52_v12  ;;  %v54_v15 = vld [vmem:[%s585_s1 + $0x40] sm:$0xff]  ;;  %v56_v18 = vld [vmem:[%s585_s1 + $0x50] sm:$0xff] }
   0x5   :  { %318 = vmatprep.subr.bf16.mxu0 %v361_v0  ;;  %343 = vmatprep.subr.bf16.mxu1 %v361_v0  ;;  %v55_v16 = vld [vmem:[%s585_s1 + $0x48] sm:$0xff]  ;;  %v57_v19 = vld [vmem:[%s585_s1 + $0x58] sm:$0xff]  ;;  %v58_v21 = vld [vmem:[%s585_s1 + $0x60] sm:$0xff] }
   0x6   :  { %298 = vmatprep.mubr.msk.f32.mxu0 %vm64_vm0, %v15_v9  ;;  %306 = vmatprep.mubr.msk.f32.mxu1 %vm64_vm0, %v31_v10  ;;  %v328_v17 = vpack.c.bf16 %v55_v16, %v54_v15  ;;  %v331_v20 = vpack.c.bf16 %v57_v19, %v56_v18  ;;  %v59_v22 = vld [vmem:[%s585_s1 + $0x68] sm:$0xff]  ;;  %v60_v24 = vld [vmem:[%s585_s1 + $0x70] sm:$0xff]  ;;  %v61_v25 = vld [vmem:[%s585_s1 + $0x78] sm:$0xff] }
   0x7   :  { %v334_v23 = vpack.c.bf16 %v59_v22, %v58_v21  ;;  %v337_v26 = vpack.c.bf16 %v61_v25, %v60_v24  ;;  %v62_v27 = vld [vmem:[%s585_s1 + $0x80] sm:$0xff]  ;;  %v63_v28 = vld [vmem:[%s585_s1 + $0x88] sm:$0xff]  ;;  %v17_v32 = vld [vmem:[%s586_s0 + $0x18] sm:$0xff] }
   0x8   :  { %320 = vmatpush1.bf16.msra.mxu0 %v319_v6  ;;  %352 = vmatpush1.bf16.msra.mxu1 %v319_v6  ;;  %v340_v29 = vpack.c.bf16 %v63_v28, %v62_v27  ;;  %v14_v30 = vld [vmem:[%s586_s0] sm:$0xff]  ;;  %v33_v33 = vld [vmem:[%s586_s0 + $0x98] sm:$0xff]  ;;  %v16_v34 = vld [vmem:[%s586_s0 + $0x10] sm:$0xff] }
   0x9   :  { %321 = vmatprep.subr.bf16.mxu0 %v361_v0  ;;  %344 = vmatprep.subr.bf16.mxu1 %v361_v0  ;;  %v30_v31 = vld [vmem:[%s586_s0 + $0x80] sm:$0xff]  ;;  %v32_v35 = vld [vmem:[%s586_s0 + $0x90] sm:$0xff]  ;;  %v19_v36 = vld [vmem:[%s586_s0 + $0x28] sm:$0xff] }
   0xa   :  { %v35_v37 = vld [vmem:[%s586_s0 + $0xa8] sm:$0xff]  ;;  %v18_v38 = vld [vmem:[%s586_s0 + $0x20] sm:$0xff]  ;;  %v21_v40 = vld [vmem:[%s586_s0 + $0x38] sm:$0xff] }
   0xb   :  { %v34_v39 = vld [vmem:[%s586_s0 + $0xa0] sm:$0xff]  ;;  %v37_v41 = vld [vmem:[%s586_s0 + $0xb8] sm:$0xff]  ;;  %v20_v42 = vld [vmem:[%s586_s0 + $0x30] sm:$0xff] }
   0xc   :  { %323 = vmatpush1.bf16.msra.mxu0 %v322_v11  ;;  %353 = vmatpush1.bf16.msra.mxu1 %v322_v11  ;;  %v36_v43 = vld [vmem:[%s586_s0 + $0xb0] sm:$0xff]  ;;  %v23_v44 = vld [vmem:[%s586_s0 + $0x48] sm:$0xff]  ;;  %v22_v46 = vld [vmem:[%s586_s0 + $0x40] sm:$0xff] }
   0xd   :  { %324 = vmatprep.subr.bf16.mxu0 %v361_v0  ;;  %345 = vmatprep.subr.bf16.mxu1 %v361_v0  ;;  %v39_v45 = vld [vmem:[%s586_s0 + $0xc8] sm:$0xff]  ;;  %v38_v47 = vld [vmem:[%s586_s0 + $0xc0] sm:$0xff]  ;;  %v25_v48 = vld [vmem:[%s586_s0 + $0x58] sm:$0xff] }
   0xe   :  { %v41_v49 = vld [vmem:[%s586_s0 + $0xd8] sm:$0xff]  ;;  %v24_v50 = vld [vmem:[%s586_s0 + $0x50] sm:$0xff]  ;;  %v27_v52 = vld [vmem:[%s586_s0 + $0x68] sm:$0xff] }
   0xf   :  { %v40_v51 = vld [vmem:[%s586_s0 + $0xd0] sm:$0xff]  ;;  %v43_v53 = vld [vmem:[%s586_s0 + $0xe8] sm:$0xff]  ;;  %v26_v54 = vld [vmem:[%s586_s0 + $0x60] sm:$0xff] }
  0x10   :  { %326 = vmatpush1.bf16.msra.mxu0 %v325_v14  ;;  %354 = vmatpush1.bf16.msra.mxu1 %v325_v14  ;;  %v42_v55 = vld [vmem:[%s586_s0 + $0xe0] sm:$0xff]  ;;  %v29_v56 = vld [vmem:[%s586_s0 + $0x78] sm:$0xff]  ;;  %v28_v58 = vld [vmem:[%s586_s0 + $0x70] sm:$0xff] }
  0x11   :  { %327 = vmatprep.subr.bf16.mxu0 %v361_v0  ;;  %346 = vmatprep.subr.bf16.mxu1 %v361_v0  ;;  %v45_v57 = vld [vmem:[%s586_s0 + $0xf8] sm:$0xff]  ;;  %v44_v59 = vld [vmem:[%s586_s0 + $0xf0] sm:$0xff]  ;;  %v314_v18 = vld [vmem:[%s587_s2] ss:$0 sm:$0xff] }
  0x14   :  { %329 = vmatpush1.bf16.msra.mxu0 %v328_v17  ;;  %355 = vmatpush1.bf16.msra.mxu1 %v328_v17 }
  0x15   :  { %330 = vmatprep.subr.bf16.mxu0 %v361_v0  ;;  %347 = vmatprep.subr.bf16.mxu1 %v361_v0 }
  0x18   :  { %332 = vmatpush1.bf16.msra.mxu0 %v331_v20  ;;  %356 = vmatpush1.bf16.msra.mxu1 %v331_v20 }
  0x19   :  { %333 = vmatprep.subr.bf16.mxu0 %v361_v0  ;;  %348 = vmatprep.subr.bf16.mxu1 %v361_v0 }
  0x1c   :  { %335 = vmatpush1.bf16.msra.mxu0 %v334_v23  ;;  %357 = vmatpush1.bf16.msra.mxu1 %v334_v23 }
  0x1d   :  { %336 = vmatprep.subr.bf16.mxu0 %v361_v0  ;;  %349 = vmatprep.subr.bf16.mxu1 %v361_v0 }
  0x20   :  { %338 = vmatpush1.bf16.msra.mxu0 %v337_v26  ;;  %358 = vmatpush1.bf16.msra.mxu1 %v337_v26 }
  0x21   :  { %339 = vmatprep.subr.bf16.mxu0 %v361_v0  ;;  %350 = vmatprep.subr.bf16.mxu1 %v361_v0 }
  0x24   :  { %341 = vmatpush1.bf16.msra.mxu0 %v340_v29  ;;  %359 = vmatpush1.bf16.msra.mxu1 %v340_v29 }
  0x27   :  { %178 = vmatmul.mubr.f32.vlgmr.msra.gmra.mrb[0].mxu0 %v14_v30  ;;  %218 = vmatmul.mubr.f32.vlgmr.msra.gmra.mrb[0].mxu1 %v30_v31 }
  0x28   :  { %299 = vmatprep.mubr.msk.f32.mxu0 %vm64_vm0, %v17_v32  ;;  %307 = vmatprep.mubr.msk.f32.mxu1 %vm64_vm0, %v33_v33 }
  0x2b   :  { %183 = vmatmul.mubr.f32.gmra.mrb[2].mxu0 %v16_v34  ;;  %223 = vmatmul.mubr.f32.gmra.mrb[2].mxu1 %v32_v35 }
  0x2c   :  { %300 = vmatprep.mubr.msk.f32.mxu0 %vm64_vm0, %v19_v36  ;;  %308 = vmatprep.mubr.msk.f32.mxu1 %vm64_vm0, %v35_v37 }
  0x2f   :  { %188 = vmatmul.mubr.f32.gmra.mrb[4].mxu0 %v18_v38  ;;  %228 = vmatmul.mubr.f32.gmra.mrb[4].mxu1 %v34_v39 }
  0x30   :  { %301 = vmatprep.mubr.msk.f32.mxu0 %vm64_vm0, %v21_v40  ;;  %309 = vmatprep.mubr.msk.f32.mxu1 %vm64_vm0, %v37_v41 }
  0x33   :  { %193 = vmatmul.mubr.f32.gmra.mrb[6].mxu0 %v20_v42  ;;  %233 = vmatmul.mubr.f32.gmra.mrb[6].mxu1 %v36_v43 }
  0x34   :  { %302 = vmatprep.mubr.msk.f32.mxu0 %vm64_vm0, %v23_v44  ;;  %310 = vmatprep.mubr.msk.f32.mxu1 %vm64_vm0, %v39_v45 }
  0x37   :  { %198 = vmatmul.mubr.f32.gmra.mrb[8].mxu0 %v22_v46  ;;  %238 = vmatmul.mubr.f32.gmra.mrb[8].mxu1 %v38_v47 }
  0x38   :  { %303 = vmatprep.mubr.msk.f32.mxu0 %vm64_vm0, %v25_v48  ;;  %311 = vmatprep.mubr.msk.f32.mxu1 %vm64_vm0, %v41_v49 }
  0x3b   :  { %203 = vmatmul.mubr.f32.gmra.mrb[10].mxu0 %v24_v50  ;;  %243 = vmatmul.mubr.f32.gmra.mrb[10].mxu1 %v40_v51 }
  0x3c   :  { %304 = vmatprep.mubr.msk.f32.mxu0 %vm64_vm0, %v27_v52  ;;  %312 = vmatprep.mubr.msk.f32.mxu1 %vm64_vm0, %v43_v53 }
  0x3f   :  { %208 = vmatmul.mubr.f32.gmra.mrb[12].mxu0 %v26_v54  ;;  %248 = vmatmul.mubr.f32.gmra.mrb[12].mxu1 %v42_v55 }
  0x40   :  { %305 = vmatprep.mubr.msk.f32.mxu0 %vm64_vm0, %v29_v56  ;;  %313 = vmatprep.mubr.msk.f32.mxu1 %vm64_vm0, %v45_v57 }
  0x43   :  { %213 = vmatmul.mubr.f32.gmra.mrb[14].mxu0 %v28_v58  ;;  %253 = vmatmul.mubr.f32.gmra.mrb[14].mxu1 %v44_v59 }
  0xfa   :  { %v179_v60 = vpop.f32.mrb[0].mxu0  ;;  %v219_v61 = vpop.f32.mrb[0].mxu1 }
  0xfb   :  { %v181_v62 = vpop.f32.mrb[1].mxu0  ;;  %v221_v63 = vpop.f32.mrb[1].mxu1 }
  0xfe   :  { %v184_v0 = vpop.f32.mrb[2].mxu0  ;;  %v224_v1 = vpop.f32.mrb[2].mxu1 }
  0xff   :  { %v186_v2 = vpop.f32.mrb[3].mxu0  ;;  %v226_v3 = vpop.f32.mrb[3].mxu1 }
 0x102   :  { %v189_v4 = vpop.f32.mrb[4].mxu0  ;;  %v229_v5 = vpop.f32.mrb[4].mxu1 }
 0x103   :  { %v191_v6 = vpop.f32.mrb[5].mxu0  ;;  %v231_v7 = vpop.f32.mrb[5].mxu1 }
 0x106   :  { %v194_v8 = vpop.f32.mrb[6].mxu0  ;;  %v234_v9 = vpop.f32.mrb[6].mxu1 }
 0x107   :  { %v196_v10 = vpop.f32.mrb[7].mxu0  ;;  %v236_v11 = vpop.f32.mrb[7].mxu1 }
 0x10a   :  { %v199_v12 = vpop.f32.mrb[8].mxu0  ;;  %v239_v13 = vpop.f32.mrb[8].mxu1 }
 0x10b   :  { %v258_v14 = vmax.f32 %v179_v60, %v199_v12  ;;  %v201_v15 = vpop.f32.mrb[9].mxu0  ;;  %v241_v16 = vpop.f32.mrb[9].mxu1 }
 0x10d   :  { %v262_v17 = vmax.f32 %v258_v14, %v219_v61 }
 0x10e   :  { %v204_v19 = vpop.f32.mrb[10].mxu0  ;;  %v244_v20 = vpop.f32.mrb[10].mxu1 }
 0x10f   :  { %v266_v21 = vmax.f32 %v262_v17, %v239_v13  ;;  %v259_v22 = vmax.f32 %v184_v0, %v204_v19  ;;  %v206_v23 = vpop.f32.mrb[11].mxu0  ;;  %v246_v24 = vpop.f32.mrb[11].mxu1 }
 0x111   :  { %v277_v25 = vadd.f32 %v314_v18, %v266_v21  ;;  %v263_v26 = vmax.f32 %v259_v22, %v224_v1 }
 0x112   :  { %v209_v27 = vpop.f32.mrb[12].mxu0  ;;  %v249_v28 = vpop.f32.mrb[12].mxu1 }
 0x113   :  { %v281_v29 = vmul.f32 0.01, %v277_v25  ;;  %v267_v30 = vmax.f32 %v263_v26, %v244_v20  ;;  %v260_v31 = vmax.f32 %v189_v4, %v209_v27  ;;  %v211_v32 = vpop.f32.mrb[13].mxu0  ;;  %v251_v33 = vpop.f32.mrb[13].mxu1 }
 0x115   :  { %v285_v34 = vmax.f32 %v277_v25, %v281_v29  ;;  %v278_v35 = vadd.f32 %v314_v18, %v267_v30  ;;  %v264_v36 = vmax.f32 %v260_v31, %v229_v5 }
 0x116   :  { %v214_v37 = vpop.f32.mrb[14].mxu0  ;;  %v254_v38 = vpop.f32.mrb[14].mxu1 }
 0x117   :  { %290 = vst.msk [vmem:[%s588_s3] sm:$0xff] %vm289_vm1, %v285_v34  ;;  %v282_v39 = vmul.f32 0.01, %v278_v35  ;;  %v268_v40 = vmax.f32 %v264_v36, %v249_v28  ;;  %v261_v41 = vmax.f32 %v194_v8, %v214_v37  ;;  %v216_v42 = vpop.f32.mrb[15].mxu0  ;;  %v256_v43 = vpop.f32.mrb[15].mxu1 }
 0x119   :  { %v286_v44 = vmax.f32 %v278_v35, %v282_v39  ;;  %v279_v45 = vadd.f32 %v314_v18, %v268_v40  ;;  %v265_v46 = vmax.f32 %v261_v41, %v234_v9 }
 0x11b   :  { %291 = vst.msk [vmem:[%s588_s3 + $0x8] sm:$0xff] %vm289_vm1, %v286_v44  ;;  %v283_v47 = vmul.f32 0.01, %v279_v45  ;;  %v269_v48 = vmax.f32 %v265_v46, %v254_v38 }
 0x11d   :  { %v287_v49 = vmax.f32 %v279_v45, %v283_v47  ;;  %v280_v50 = vadd.f32 %v314_v18, %v269_v48 }
 0x11f   :  { %292 = vst.msk [vmem:[%s588_s3 + $0x10] sm:$0xff] %vm289_vm1, %v287_v49  ;;  %v284_v51 = vmul.f32 0.01, %v280_v50 }
 0x121   :  { %v288_v52 = vmax.f32 %v280_v50, %v284_v51 }
 0x123   :  { %293 = vst.msk [vmem:[%s588_s3 + $0x18] sm:$0xff] %vm289_vm1, %v288_v52 }

</bundles_post_ra>
